<compile_context>
chip_gen: v7x
topology: tpu7x:2x2x1
jax: 0.10.0
libtpu: 0.0.40
codegen_flags: <defaults>
</compile_context>

<pallas_src>
import jax
import jax.numpy as jnp
from jax.experimental import pallas as pl
from jax.experimental.pallas import tpu as pltpu

_LANE = 128
_SUBLANE = 8
# 1024 rows x 128 lanes x 4 B = 512 KiB per block buffer; with input + output
# each double-buffered that's ~2 MiB live VMEM — ample headroom everywhere.
_MAX_BLOCK_ROWS = 1024


def _latent_copy_kernel(z_ref, o_ref):
    # Pure pass-through of the latent block (VMEM -> VMEM).
    o_ref[...] = z_ref[...]


def _pick_block_rows(rows: int):
    """Largest divisor of `rows` that is a multiple of 8 and <= _MAX_BLOCK_ROWS."""
    best = None
    upper = min(rows, _MAX_BLOCK_ROWS)
    for tb in range(_SUBLANE, upper + 1, _SUBLANE):
        if rows % tb == 0:
            best = tb
    return best


def stylegan2_latent_forward(z: jax.Array):
    """Equivalent of StyleGAN2LatentSpace.forward(): returns (z,).

    z: [batch_size, dim_z] float32 parameter.
    """
    batch_size, dim_z = z.shape
    total = batch_size * dim_z

    if total >= _LANE and total % _LANE == 0:
        # Lane-dense path: flatten to (rows, 128) so stores are full-lane,
        # tile rows for DMA pipelining, shard the grid across TCs.
        rows = total // _LANE
        z2 = z.reshape(rows, _LANE)
        tb = _pick_block_rows(rows)
        if tb is None:
            tb = rows  # full-array block is always legal
        out2 = pl.pallas_call(
            _latent_copy_kernel,
            out_shape=jax.ShapeDtypeStruct((rows, _LANE), z.dtype),
            grid=(rows // tb,),
            in_specs=[pl.BlockSpec((tb, _LANE), lambda i: (i, 0))],
            out_specs=pl.BlockSpec((tb, _LANE), lambda i: (i, 0)),
            input_output_aliases={0: 0},
            compiler_params=pltpu.CompilerParams(
                dimension_semantics=("parallel",)
            ),
        )(z2)
        out = out2.reshape(batch_size, dim_z)
    else:
        # Small / ragged path: single whole-array block (full dims exempt from
        # the (8, 128) divisibility rule), still aliased input -> output.
        out = pl.pallas_call(
            _latent_copy_kernel,
            out_shape=jax.ShapeDtypeStruct((batch_size, dim_z), z.dtype),
            grid=(1,),
            in_specs=[pl.BlockSpec((batch_size, dim_z), lambda i: (0, 0))],
            out_specs=pl.BlockSpec((batch_size, dim_z), lambda i: (0, 0)),
            input_output_aliases={0: 0},
            compiler_params=pltpu.CompilerParams(
                dimension_semantics=("arbitrary",)
            ),
        )(z)

    # forward() returns a tuple, matching the PyTorch module.
    return (out,)


if __name__ == "__main__":
    # Config implied by the module's __init__: batch_size, dim_z.
    batch_size = 2
    dim_z = 32

    # Deterministic "parameter" initialization (stands in for torch.randn).
    key = jax.random.PRNGKey(0)
    z_param = jax.random.normal(key, (batch_size, dim_z), dtype=jnp.float32)

    # Small/ragged path (2 * 32 = 64 < 128 -> whole-array block).
    (out,) = stylegan2_latent_forward(z_param)
    out = jax.block_until_ready(out)
    assert out.shape == (batch_size, dim_z)
    assert out.dtype == jnp.float32
    assert bool(jnp.array_equal(out, z_param))

    # Also exercise the lane-dense tiled path with a slightly larger latent.
    key2 = jax.random.PRNGKey(1)
    z_big = jax.random.normal(key2, (8, 512), dtype=jnp.float32)
    (out_big,) = stylegan2_latent_forward(z_big)
    out_big = jax.block_until_ready(out_big)
    assert out_big.shape == (8, 512)
    assert bool(jnp.array_equal(out_big, z_big))

    print("KERNEL_OK")
</pallas_src>

<mosaic_0001>
module attributes {stable_mosaic.version = 11 : i64} {
  func.func @_latent_copy_kernel(%arg0: i32, %arg1: memref<2x32xf32, #tpu.memory_space<vmem>>, %arg2: memref<2x32xf32, #tpu.memory_space<vmem>>) attributes {dimension_semantics = [#tpu.dimension_semantics<arbitrary>], iteration_bounds = array<i64: 1>, scalar_prefetch = 0 : i64, scratch_operands = 0 : i64, tpu.core_type = #tpu.core_type<tc>, window_params = [{pipeline_mode = #tpu.pipeline_mode<synchronous>, transform_indices = @transform_0, window_bounds = array<i64: 2, 32>}, {pipeline_mode = #tpu.pipeline_mode<synchronous>, transform_indices = @transform_1, window_bounds = array<i64: 2, 32>}]} {
    %c0 = arith.constant 0 : index
    %c0_0 = arith.constant 0 : index
    %0 = vector.load %arg1[%c0, %c0_0] : memref<2x32xf32, #tpu.memory_space<vmem>>, vector<2x32xf32>
    %c0_1 = arith.constant 0 : index
    %c0_2 = arith.constant 0 : index
    %1 = vector.load %arg2[%c0_1, %c0_2] : memref<2x32xf32, #tpu.memory_space<vmem>>, vector<2x32xf32>
    tpu.vector_store %arg2[%c0_1, %c0_2], %0 {strides = array<i32>} : memref<2x32xf32, #tpu.memory_space<vmem>>, vector<2x32xf32>,
    return
  }
  func.func @transform_0(%arg0: i32) -> (i32, i32) {
    %c0_i32 = arith.constant 0 : i32
    %c0_i32_0 = arith.constant 0 : i32
    %c0_i32_1 = arith.constant 0 : i32
    return %c0_i32, %c0_i32_0 : i32, i32
  }
  func.func @transform_1(%arg0: i32) -> (i32, i32) {
    %c0_i32 = arith.constant 0 : i32
    %c0_i32_0 = arith.constant 0 : i32
    %c0_i32_1 = arith.constant 0 : i32
    return %c0_i32, %c0_i32_0 : i32, i32
  }
}

</mosaic_0001>

<bundles_post_ra>
// kernel: tpu_custom_call.1
= control target key start
LH: loop header
LB: loop body
LE: loop exit
PB: predicated region body
PF: predicated region fallthrough
CT: control target
= control target key end

     0   :  { %6 = vsyncpa [#allocation3], 0  ;;  %s125_s0 = inlined_call_operand.hbm [shape: f32[2,32], index: 0, kind: input, shape index: {}, may-alias: {0,1}]   ;;  %s126_s1 = inlined_call_operand.hbm [shape: f32[2,32], index: 1, kind: output, shape index: {}, may-alias: {0,1}]  }
   0x1   :  { %7 = vsyncpa [#allocation4], 0  ;;  %s89_s6 = smov [#allocation2]   ;;  %s41_s10 = scalar_lea.hbm %s125_s0, 32 }
   0x2   :  { %s14_s7 = sshll.u32 %s89_s6, 4  ;;  %p42_p0 = scmp.ne.s32.totalorder %s125_s0, %s41_s10  ;;  %s15_s7 = int_to_ptr.vmem [resolvable:$true] %s14_s7 }
   0x3   :  { %p45_p1 = scmp.lt.u32.totalorder %s41_s10, %s125_s0 }
   0x5   :  { %p47_p2 = pnand %p45_p1, %p42_p0 }
   0x7   :  { %50 = shalt.err (!%p47_p2)
}
   0x8   :  { %s51_s15 = scalar_lea.vmem %s15_s7, 32  ;;  %p56_p4 = scmp.lt.s32.totalorder %s15_s7, %s15_s7 }
   0x9   :  { %p52_p3 = scmp.ne.s32.totalorder %s15_s7, %s51_s15  ;;  %p57_p5 = scmp.lt.s32.totalorder %s51_s15, %s51_s15 }
   0xb   :  { %p58_p6 = por %p57_p5, %p56_p4 }
   0xd   :  { %p59_p7 = pnand %p58_p6, %p52_p3 }
   0xf   :  { %62 = shalt.err (!%p59_p7)
}
  0x10   :  { %17 = dma.hbm_to_vmem [thread:$0]  %s125_s0, 32, %s15_s7, [#allocation3]  }
  0x11   :  { %85 = dma.done.wait [#allocation3], 32  }
  0x12   :  { %86 = vsyncadd [#allocation3], 4294967264  ;;  %s90_s18 = smov [#allocation5]   ;;  %vm22_vm0 = vcmask 254976   ;;  %v21_v0 = vld [vmem:[#allocation2] sm:$0x3] }
  0x13   :  { %s30_s19 = sshll.u32 %s90_s18, 4  ;;  %23 = vst.msk [vmem:[#allocation5] sm:$0x3] %vm22_vm0, %v21_v0  ;;  %s31_s19 = int_to_ptr.vmem [resolvable:$true] %s30_s19 }
  0x14   :  { %s63_s20 = scalar_lea.vmem %s31_s19, 32  ;;  %p68_p9 = scmp.lt.s32.totalorder %s31_s19, %s31_s19 }
  0x15   :  { %p64_p8 = scmp.ne.s32.totalorder %s31_s19, %s63_s20  ;;  %p69_p10 = scmp.lt.s32.totalorder %s63_s20, %s63_s20 }
  0x17   :  { %p70_p11 = por %p69_p10, %p68_p9 }
  0x19   :  { %p71_p12 = pnand %p70_p11, %p64_p8 }
  0x1b   :  { %74 = shalt.err (!%p71_p12)
}
  0x1c   :  { %s75_s23 = scalar_lea.hbm %s126_s1, 32 }
  0x1d   :  { %p76_p13 = scmp.ne.s32.totalorder %s126_s1, %s75_s23  ;;  %p79_p0 = scmp.lt.u32.totalorder %s75_s23, %s126_s1 }
  0x1f   :  { %p81_p1 = pnand %p79_p0, %p76_p13 }
  0x21   :  { %84 = shalt.err (!%p81_p1)
}
  0x22   :  { %33 = dma.vmem_to_hbm [thread:$0]  %s31_s19, 32, %s126_s1, [#allocation4]  }
  0x23   :  { %87 = dma.done.wait [#allocation4], 32  }
  0x24   :  { %88 = vsyncadd [#allocation4], 4294967264 }
  0x25   :  { %37 = vsyncpa [#allocation3], 1 }
  0x26   :  { %38 = vsyncpa [#allocation4], 1 }

</bundles_post_ra>
